<compile_context>
chip_gen: v7x
topology: tpu7x:2x2x1
jax: 0.10.0
libtpu: 0.0.40
codegen_flags: <defaults>
</compile_context>

<pallas_src>
import functools
import math

import jax
import jax.numpy as jnp
from jax import lax
from jax.experimental import pallas as pl
from jax.experimental.pallas import tpu as pltpu


# ---------------------------------------------------------------------------
# helpers
# ---------------------------------------------------------------------------
def _round_up(x, m):
    return ((x + m - 1) // m) * m


def _pick_tile(dim, cap, multiple=128):
    """Largest tile <= cap that divides dim and is a multiple of `multiple`,
    falling back to the full dimension (always legal for BlockSpec)."""
    if dim <= cap:
        return dim
    t = (cap // multiple) * multiple
    while t >= multiple:
        if dim % t == 0:
            return t
        t -= multiple
    return dim


# ---------------------------------------------------------------------------
# fused linear:  y = x @ W + b   (M, K) @ (K, N) -> (M, N)
# ---------------------------------------------------------------------------
def _linear_kernel(x_ref, w_ref, b_ref, o_ref, acc_ref):
    k = pl.program_id(2)

    @pl.when(k == 0)
    def _():
        acc_ref[...] = jnp.zeros_like(acc_ref)

    acc_ref[...] += jnp.dot(x_ref[...], w_ref[...],
                            preferred_element_type=jnp.float32)

    @pl.when(k == pl.num_programs(2) - 1)
    def _():
        o_ref[...] = (acc_ref[...] + b_ref[...]).astype(o_ref.dtype)


def linear(x2d, w, b, *, tm_cap=256, tn_cap=256, tk_cap=512, compute_dtype=None):
    """x2d: (M, K), w: (K, N), b: (N,) -> (M, N)."""
    M, K = x2d.shape
    Kw, N = w.shape
    assert K == Kw
    out_dtype = x2d.dtype

    if compute_dtype is not None:
        x2d = x2d.astype(compute_dtype)
        w = w.astype(compute_dtype)

    tm = min(tm_cap, _round_up(M, 8))
    Mp = _round_up(M, tm)
    if Mp != M:
        x2d = jnp.pad(x2d, ((0, Mp - M), (0, 0)))

    tn = _pick_tile(N, tn_cap)
    tk = _pick_tile(K, tk_cap)
    b2 = b.reshape(1, N).astype(jnp.float32)

    grid = (Mp // tm, N // tn, K // tk)
    bytes_accessed = (x2d.size * x2d.dtype.itemsize
                      + w.size * w.dtype.itemsize
                      + N * 4
                      + Mp * N * jnp.dtype(out_dtype).itemsize)
    cost = pl.CostEstimate(flops=2 * Mp * K * N, transcendentals=0,
                           bytes_accessed=bytes_accessed)

    out = pl.pallas_call(
        _linear_kernel,
        out_shape=jax.ShapeDtypeStruct((Mp, N), out_dtype),
        grid_spec=pltpu.PrefetchScalarGridSpec(
            num_scalar_prefetch=0,
            grid=grid,
            in_specs=[
                pl.BlockSpec((tm, tk), lambda i, j, k: (i, k)),   # x tile
                pl.BlockSpec((tk, tn), lambda i, j, k: (k, j)),   # W slab
                pl.BlockSpec((1, tn), lambda i, j, k: (0, j)),    # bias slab
            ],
            out_specs=pl.BlockSpec((tm, tn), lambda i, j, k: (i, j)),
            scratch_shapes=[pltpu.VMEM((tm, tn), jnp.float32)],
        ),
        compiler_params=pltpu.CompilerParams(
            dimension_semantics=("parallel", "parallel", "arbitrary")),
        cost_estimate=cost,
    )(x2d, w, b2)

    return out[:M]


# ---------------------------------------------------------------------------
# causal flash attention over (B*nh, T, hd)
# ---------------------------------------------------------------------------
def _attn_kernel(q_ref, k_ref, v_ref, o_ref, m_sc, l_sc, acc_sc,
                 *, scale, tq, tkv):
    i = pl.program_id(1)   # query tile
    j = pl.program_id(2)   # key/value tile

    @pl.when(j == 0)
    def _():
        m_sc[...] = jnp.full_like(m_sc, -jnp.inf)
        l_sc[...] = jnp.zeros_like(l_sc)
        acc_sc[...] = jnp.zeros_like(acc_sc)

    # Skip key blocks that lie entirely above the causal diagonal.
    @pl.when(j * tkv <= i * tq + (tq - 1))
    def _():
        q = q_ref[0]            # (tq, hd)
        k = k_ref[0]            # (tkv, hd)
        v = v_ref[0]            # (tkv, hd)

        s = lax.dot_general(q, k, (((1,), (1,)), ((), ())),
                            preferred_element_type=jnp.float32)
        s = s * scale

        row = i * tq + lax.broadcasted_iota(jnp.int32, (tq, tkv), 0)
        col = j * tkv + lax.broadcasted_iota(jnp.int32, (tq, tkv), 1)
        s = jnp.where(row >= col, s, -1e30)

        m_prev = m_sc[...]
        m_new = jnp.maximum(m_prev, s.max(axis=-1, keepdims=True))
        alpha = jnp.exp(m_prev - m_new)
        p = jnp.exp(s - m_new)

        l_sc[...] = alpha * l_sc[...] + p.sum(axis=-1, keepdims=True)
        acc_sc[...] = alpha * acc_sc[...] + jnp.dot(
            p.astype(v.dtype), v, preferred_element_type=jnp.float32)
        m_sc[...] = m_new

    @pl.when(j == pl.num_programs(2) - 1)
    def _():
        o_ref[0] = (acc_sc[...] / l_sc[...]).astype(o_ref.dtype)


def causal_attention(q, k, v, *, blk_cap=256):
    """q, k, v: (BH, T, hd) -> (BH, T, hd) with causal softmax(q k^T / sqrt(hd)) v."""
    BH, T, hd = q.shape
    scale = 1.0 / math.sqrt(hd)

    blk = min(blk_cap, _round_up(T, 8))
    Tp = _round_up(T, blk)
    if Tp != T:
        pad = ((0, 0), (0, Tp - T), (0, 0))
        q = jnp.pad(q, pad)
        k = jnp.pad(k, pad)
        v = jnp.pad(v, pad)

    grid = (BH, Tp // blk, Tp // blk)
    kernel = functools.partial(_attn_kernel, scale=scale, tq=blk, tkv=blk)
    cost = pl.CostEstimate(flops=4 * BH * Tp * Tp * hd,
                           transcendentals=BH * Tp * Tp,
                           bytes_accessed=4 * BH * Tp * hd * q.dtype.itemsize)

    out = pl.pallas_call(
        kernel,
        out_shape=jax.ShapeDtypeStruct((BH, Tp, hd), q.dtype),
        grid_spec=pltpu.PrefetchScalarGridSpec(
            num_scalar_prefetch=0,
            grid=grid,
            in_specs=[
                pl.BlockSpec((1, blk, hd), lambda b, i, j: (b, i, 0)),  # q
                pl.BlockSpec((1, blk, hd), lambda b, i, j: (b, j, 0)),  # k
                pl.BlockSpec((1, blk, hd), lambda b, i, j: (b, j, 0)),  # v
            ],
            out_specs=pl.BlockSpec((1, blk, hd), lambda b, i, j: (b, i, 0)),
            scratch_shapes=[
                pltpu.VMEM((blk, 1), jnp.float32),    # running max
                pltpu.VMEM((blk, 1), jnp.float32),    # running denom
                pltpu.VMEM((blk, hd), jnp.float32),   # output accumulator
            ],
        ),
        compiler_params=pltpu.CompilerParams(
            dimension_semantics=("parallel", "parallel", "arbitrary")),
        cost_estimate=cost,
    )(q, k, v)

    return out[:, :T, :]


# ---------------------------------------------------------------------------
# full CausalSelfAttention forward
# ---------------------------------------------------------------------------
def causal_self_attention(x, w_attn, b_attn, w_proj, b_proj, n_head,
                          *, compute_dtype=None):
    """x: (B, T, C). Weights stored as (in, out) (transposed vs. torch Linear)."""
    B, T, C = x.shape
    assert C % n_head == 0
    hd = C // n_head

    # QKV projection (fused matmul + bias kernel).
    qkv = linear(x.reshape(B * T, C), w_attn, b_attn, compute_dtype=compute_dtype)
    qkv = qkv.reshape(B, T, 3 * C)
    q, k, v = jnp.split(qkv, 3, axis=-1)

    # (B, T, nh, hd) -> (B, nh, T, hd) -> (B*nh, T, hd). Head reshuffle stays in XLA.
    def to_heads(t):
        return t.reshape(B, T, n_head, hd).transpose(0, 2, 1, 3).reshape(B * n_head, T, hd)

    q, k, v = to_heads(q), to_heads(k), to_heads(v)
    if compute_dtype is not None:
        q, k, v = (t.astype(compute_dtype) for t in (q, k, v))

    # Causal flash attention.
    y = causal_attention(q, k, v)

    # Back to (B*T, C) and output projection.
    y = y.reshape(B, n_head, T, hd).transpose(0, 2, 1, 3).reshape(B * T, C)
    y = y.astype(x.dtype)
    out = linear(y, w_proj, b_proj, compute_dtype=compute_dtype)
    return out.reshape(B, T, C)


# ---------------------------------------------------------------------------
# pure-JAX reference (mirrors the PyTorch module)
# ---------------------------------------------------------------------------
def causal_self_attention_reference(x, w_attn, b_attn, w_proj, b_proj, n_head):
    B, T, C = x.shape
    hd = C // n_head
    qkv = jnp.einsum("btc,cd->btd", x, w_attn) + b_attn
    q, k, v = jnp.split(qkv, 3, axis=-1)
    q = q.reshape(B, T, n_head, hd).transpose(0, 2, 1, 3)
    k = k.reshape(B, T, n_head, hd).transpose(0, 2, 1, 3)
    v = v.reshape(B, T, n_head, hd).transpose(0, 2, 1, 3)
    att = jnp.einsum("bhqd,bhkd->bhqk", q, k) * (1.0 / math.sqrt(hd))
    mask = jnp.tril(jnp.ones((T, T), dtype=bool))
    att = jnp.where(mask[None, None], att, -jnp.inf)
    att = jax.nn.softmax(att, axis=-1)
    y = jnp.einsum("bhqk,bhkd->bhqd", att, v)
    y = y.transpose(0, 2, 1, 3).reshape(B, T, C)
    return jnp.einsum("btc,cd->btd", y, w_proj) + b_proj


if __name__ == "__main__":
    # Small config consistent with the module (C divisible by n_head).
    B, T, C, n_head = 2, 8, 128, 4

    key = jax.random.PRNGKey(0)
    kx, kw1, kb1, kw2, kb2 = jax.random.split(key, 5)

    x = jax.random.normal(kx, (B, T, C), dtype=jnp.float32)

    # nn.Linear(C, 3C) and nn.Linear(C, C), stored transposed as (in, out).
    lim1 = 1.0 / math.sqrt(C)
    w_attn = jax.random.uniform(kw1, (C, 3 * C), jnp.float32, -lim1, lim1)
    b_attn = jax.random.uniform(kb1, (3 * C,), jnp.float32, -lim1, lim1)
    w_proj = jax.random.uniform(kw2, (C, C), jnp.float32, -lim1, lim1)
    b_proj = jax.random.uniform(kb2, (C,), jnp.float32, -lim1, lim1)

    y = causal_self_attention(x, w_attn, b_attn, w_proj, b_proj, n_head)
    y = jax.block_until_ready(y)

    y_ref = causal_self_attention_reference(x, w_attn, b_attn, w_proj, b_proj, n_head)
    assert y.shape == (B, T, C)
    assert jnp.allclose(y, y_ref, atol=1e-3, rtol=1e-3), \
        f"max abs err = {jnp.max(jnp.abs(y - y_ref))}"

    print("KERNEL_OK")
</pallas_src>

<mosaic_0001>
module attributes {stable_mosaic.version = 11 : i64} {
  func.func @_linear_kernel(%arg0: i32, %arg1: i32, %arg2: i32, %arg3: memref<16x128xf32, #tpu.memory_space<vmem>>, %arg4: memref<128x128xf32, #tpu.memory_space<vmem>>, %arg5: memref<1x128xf32, #tpu.memory_space<vmem>>, %arg6: memref<16x128xf32, #tpu.memory_space<vmem>>, %arg7: memref<16x128xf32, #tpu.memory_space<vmem>>) attributes {dimension_semantics = [#tpu.dimension_semantics<parallel>, #tpu.dimension_semantics<parallel>, #tpu.dimension_semantics<arbitrary>], iteration_bounds = array<i64: 1, 3, 1>, scalar_prefetch = 0 : i64, scratch_operands = 1 : i64, tpu.core_type = #tpu.core_type<tc>, window_params = [{transform_indices = @transform_0, window_bounds = array<i64: 16, 128>}, {transform_indices = @transform_1, window_bounds = array<i64: 128, 128>}, {transform_indices = @transform_2, window_bounds = array<i64: 1, 128>}, {transform_indices = @transform_3, window_bounds = array<i64: 16, 128>}]} {
    %c0_i32 = arith.constant 0 : i32
    %0 = arith.cmpi eq, %arg2, %c0_i32 : i32
    %1 = arith.extui %0 : i1 to i32
    %c0_i32_0 = arith.constant 0 : i32
    %2 = arith.cmpi ne, %1, %c0_i32_0 : i32
    scf.if %2 {
      %cst_10 = arith.constant 0.000000e+00 : f32
      %12 = vector.broadcast %cst_10 : f32 to vector<16x128xf32>
      %c0_11 = arith.constant 0 : index
      %c0_12 = arith.constant 0 : index
      %13 = vector.load %arg7[%c0_11, %c0_12] : memref<16x128xf32, #tpu.memory_space<vmem>>, vector<16x128xf32>
      tpu.vector_store %arg7[%c0_11, %c0_12], %12 {strides = array<i32>} : memref<16x128xf32, #tpu.memory_space<vmem>>, vector<16x128xf32>,
    } else {
    }
    %c0 = arith.constant 0 : index
    %c0_1 = arith.constant 0 : index
    %3 = vector.load %arg7[%c0, %c0_1] : memref<16x128xf32, #tpu.memory_space<vmem>>, vector<16x128xf32>
    %c0_2 = arith.constant 0 : index
    %c0_3 = arith.constant 0 : index
    %4 = vector.load %arg3[%c0_2, %c0_3] : memref<16x128xf32, #tpu.memory_space<vmem>>, vector<16x128xf32>
    %c0_4 = arith.constant 0 : index
    %c0_5 = arith.constant 0 : index
    %5 = vector.load %arg4[%c0_4, %c0_5] : memref<128x128xf32, #tpu.memory_space<vmem>>, vector<128x128xf32>
    %cst = arith.constant dense<0.000000e+00> : vector<16x128xf32>
    %6 = tpu.matmul %4, %5, %cst {dimension_numbers = #tpu.dot_dimension_numbers<[1], [0], [0], [1], [0, 0, 1, 1], [], []>} : vector<16x128xf32>, vector<128x128xf32>, vector<16x128xf32> -> vector<16x128xf32>
    %7 = arith.addf %3, %6 : vector<16x128xf32>
    %c0_6 = arith.constant 0 : index
    %c0_7 = arith.constant 0 : index
    %8 = vector.load %arg7[%c0_6, %c0_7] : memref<16x128xf32, #tpu.memory_space<vmem>>, vector<16x128xf32>
    tpu.vector_store %arg7[%c0_6, %c0_7], %7 {strides = array<i32>} : memref<16x128xf32, #tpu.memory_space<vmem>>, vector<16x128xf32>,
    %c0_i32_8 = arith.constant 0 : i32
    %9 = arith.cmpi eq, %arg2, %c0_i32_8 : i32
    %10 = arith.extui %9 : i1 to i32
    %c0_i32_9 = arith.constant 0 : i32
    %11 = arith.cmpi ne, %10, %c0_i32_9 : i32
    scf.if %11 {
      %c0_10 = arith.constant 0 : index
      %c0_11 = arith.constant 0 : index
      %12 = vector.load %arg7[%c0_10, %c0_11] : memref<16x128xf32, #tpu.memory_space<vmem>>, vector<16x128xf32>
      %c0_12 = arith.constant 0 : index
      %c0_13 = arith.constant 0 : index
      %13 = vector.load %arg5[%c0_12, %c0_13] : memref<1x128xf32, #tpu.memory_space<vmem>>, vector<1x128xf32>
      %14 = vector.broadcast %13 : vector<1x128xf32> to vector<16x128xf32>
      %15 = arith.addf %12, %14 : vector<16x128xf32>
      %c0_14 = arith.constant 0 : index
      %c0_15 = arith.constant 0 : index
      %16 = vector.load %arg6[%c0_14, %c0_15] : memref<16x128xf32, #tpu.memory_space<vmem>>, vector<16x128xf32>
      tpu.vector_store %arg6[%c0_14, %c0_15], %15 {strides = array<i32>} : memref<16x128xf32, #tpu.memory_space<vmem>>, vector<16x128xf32>,
    } else {
    }
    return
  }
  func.func @transform_0(%arg0: i32, %arg1: i32, %arg2: i32) -> (i32, i32) {
    %c0_i32 = arith.constant 0 : i32
    return %arg0, %arg2 : i32, i32
  }
  func.func @transform_1(%arg0: i32, %arg1: i32, %arg2: i32) -> (i32, i32) {
    %c0_i32 = arith.constant 0 : i32
    return %arg2, %arg1 : i32, i32
  }
  func.func @transform_2(%arg0: i32, %arg1: i32, %arg2: i32) -> (i32, i32) {
    %c0_i32 = arith.constant 0 : i32
    %c0_i32_0 = arith.constant 0 : i32
    return %c0_i32, %arg1 : i32, i32
  }
  func.func @transform_3(%arg0: i32, %arg1: i32, %arg2: i32) -> (i32, i32) {
    %c0_i32 = arith.constant 0 : i32
    return %arg0, %arg1 : i32, i32
  }
}

</mosaic_0001>

<bundles_post_ra>
// kernel: tpu_custom_call.1
= control target key start
LH: loop header
LB: loop body
LE: loop exit
PB: predicated region body
PF: predicated region fallthrough
CT: control target
= control target key end

     0   :  { %8 = vsyncpa [#allocation4], 0  ;;  %s1102_s0 = inlined_call_operand.hbm [shape: f32[16,128], index: 0, kind: input, shape index: {}]   ;;  %s1103_s1 = inlined_call_operand.hbm [shape: f32[128,384], index: 1, kind: input, shape index: {}]   ;;  %s1104_s2 = inlined_call_operand.vmem [shape: f32[1,384], index: 2, kind: input, shape index: {}]   ;;  %s1105_s3 = inlined_call_operand.hbm [shape: f32[16,384], index: 3, kind: output, shape index: {}]  }
   0x1   :  { %9 = vsyncpa [#allocation7], 0 }
   0x2   :  { %11 = vsyncpa [#allocation7 + $0x1], 0 }
   0x3   :  { %12 = vsyncpa [#allocation5], 0 }
   0x4   :  { %14 = vsyncpa [#allocation5 + $0x1], 0  ;;  %s862_s12 = smov 0   ;;  %s864_s13 = smov 0  }
   0x5   :  { %s866_s14 = smov 0   ;;  %s868_s15 = smov 0  }
   0x6   :  { %s870_s16 = smov 0   ;;  %s872_s17 = smov 0  }
   0x7 LB: > { %s507_s18 = sadd.s32 4294967295, %s831_s17   ;;  %s508_s19 = sadd.s32 4294967294, %s831_s17   ;;  %s831_s17 = sphi %s872_s17, %s20_s17   ;;  %s827_s16 = sphi %s870_s16, %s1132_s16   ;;  %s823_s15 = sphi %s868_s15, %s1131_s15   ;;  %s819_s14 = sphi %s866_s14, %s1130_s14   ;;  %s815_s13 = sphi %s864_s13, %s1129_s13   ;;  %s811_s12 = sphi %s862_s12, %s1128_s12  }
   0x8   : > { %p83_p0 = scmp.ne.s32.totalorder %s819_s14, %s815_s13  ;;  %p84_p1 = scmp.eq.s32.totalorder %s831_s17, 0 }
   0x9   : > { %p89_p2 = scmp.ne.s32.totalorder %s815_s13, %s811_s12  ;;  %p899_p3 = scmp.eq.s32.totalorder %s507_s18, 0 }
   0xa   : > { %p903_p4 = por %p84_p1, %p83_p0  ;;  %p141_p5 = scmp.eq.s32.totalorder %s507_s18, 2 }
   0xb   : > { %s1113_s20 = scalar_select %p899_p3, 1, 0 }
   0xc   : > { %p909_p6 = por %p899_p3, %p89_p2  ;;  %p147_p7 = scmp.eq.s32.totalorder %s508_s19, 2 }
   0xd   : > { %p913_p8 = por %p141_p5, %p83_p0  ;;  %p509_p9 = scmp.ge.s32.totalorder %s831_s17, 1 }
   0xe   : > { %s1115_s22 = scalar_select %p909_p6, 1, 0 }
   0xf   : > { %s1116_s23 = scalar_select %p913_p8, 1, 0 }
  0x10   : > { %p918_p10 = por %p147_p7, %p89_p2  ;;  %p154_p11 = scmp.lt.s32.totalorder %s831_s17, 4 }
  0x11   : > { %s833_s26 = smov [#allocation3]   ;;  %p629_p0 = scmp.lt.s32.totalorder %s831_s17, 3 }
  0x12   : > { %s1117_s24 = scalar_select %p918_p10, 1, 0 }
  0x13   : > { %p923_p12 = pnand %p509_p9, %p154_p11  ;;  %s170_s27 = sshll.u32 %s833_s26, 4  ;;  %s171_s27 = int_to_ptr.vmem [resolvable:$true] %s170_s27 }
  0x14   : > { %p938_p2 = pnand %p629_p0, %p903_p4  ;;  %s35_s30 = sadd.s32 1, %s827_s16 }
  0x15   : > { %s1118_s25 = scalar_select %p923_p12, 1, 0 }
  0x16   : > { %p616_p13 = pneg %p923_p12  ;;  %s687_s6 = scalar_lea.hbm %s1102_s0, 256 }
  0x17   : > { %s1120_s29 = scalar_select %p938_p2, 1, 0 }
  0x18   : > { %p932_p1 = pnand %p616_p13, %p899_p3  ;;  %p688_p5 = scmp.ne.s32.totalorder %s1102_s0, %s687_s6 }
  0x19   : > { %p694_p4 = scmp.lt.u32.totalorder %s687_s6, %s1102_s0 }
  0x1a   : > { %p689_p7 = pneg %p932_p1 }
  0x1c   : > { %p690_p9 = pnand %p689_p7, %p688_p5 }
  0x1e   : > { %p691_p11 = pneg %p690_p9 }
  0x20   : > { %p696_p13 = pnand %p694_p4, %p691_p11 }
  0x22   : > { %699 = shalt.err (!%p696_p13)
}
  0x23   : > { %s700_s11 = scalar_lea.vmem %s171_s27, 256  ;;  %p708_p6 = scmp.lt.s32.totalorder %s171_s27, %s171_s27 }
  0x24   : > { %p701_p0 = scmp.ne.s32.totalorder %s171_s27, %s700_s11  ;;  %p709_p3 = scmp.lt.s32.totalorder %s700_s11, %s700_s11 }
  0x26   : > { %p703_p10 = pnand %p701_p0, %p689_p7  ;;  %p710_p12 = por %p709_p3, %p708_p6 }
  0x28   : > { %p704_p8 = pneg %p703_p10 }
  0x2a   : > { %p711_p2 = pnand %p710_p12, %p704_p8 }
  0x2c   : > { %714 = shalt.err (!%p711_p2)
}
  0x2d   : > { %s1112_s18 = smov 128   ;;  %s835_s19 = smov 8  }
  0x2e   : > { %619 = dma.hbm_to_vmem [thread:$0]  (!%p932_p1), %s1102_s0, 256, %s171_s27, [#allocation4], %s1112_s18, %s1112_s18, %s835_s19  }
  0x2f   : > { %p37_p10 = scmp.ge.s32.totalorder %s35_s30, 3  ;;  %s76_s4 = sadd.s32 1, %s819_s14 }
  0x30   : > { %s184_s5 = sand.u32 1, %s819_s14   ;;  %s513_s8 = sshll.u32 %s827_s16, 7 }
  0x31   : > { %s1134_s30 = smov (%p37_p10, %s35_s30), 0  ;;  %s512_s6 = sshll.u32 %s184_s5, 7 }
  0x32   : > { %s72_s7 = ssub.s32 %s827_s16, %s1134_s30  ;;  %s972_s10 = scalar_lea.hbm %s1103_s1, %s513_s8 }
  0x33   : > { %p74_p3 = scmp.eq.s32.totalorder %s72_s7, 0  ;;  %s188_s27 = scalar_lea.vmem [#allocation6], %s512_s6 }
  0x34   : > { %s197_s11 = sshll.u32 %s188_s27, 4  ;;  %s979_s26 = scalar_lea.sflag [#allocation7], %s184_s5  ;;  %s977_s11 = int_to_ptr.vmem [resolvable:$true] %s197_s11 }
  0x35   : > { %s975_s21 = scalar_select %p74_p3, %s819_s14, %s76_s4  }
  0x36   : > { %s715_s18 = scalar_lea.hbm %s972_s10, 2048  ;;  %p1121_p8 = scmp.ne.s32.totalorder %s1120_s29, 0 }
  0x37   : > { %p716_p6 = scmp.ne.s32.totalorder %s972_s10, %s715_s18  ;;  %s720_s28 = scalar_lea.hbm %s1103_s1, 6144 }
  0x38   : > { %p717_p12 = pneg %p1121_p8  ;;  %p721_p5 = scmp.lt.u32.totalorder %s972_s10, %s1103_s1 }
  0x39   : > { %p722_p7 = scmp.lt.u32.totalorder %s720_s28, %s715_s18  ;;  %p724_p11 = scmp.lt.u32.totalorder %s715_s18, %s972_s10 }
  0x3a   : > { %p718_p1 = pnand %p717_p12, %p716_p6 }
  0x3b   : > { %p723_p9 = por %p722_p7, %p721_p5 }
  0x3c   : > { %p719_p2 = pneg %p718_p1 }
  0x3d   : > { %p725_p4 = por %p724_p11, %p723_p9 }
  0x3f   : > { %p726_p13 = pnand %p725_p4, %p719_p2 }
  0x41   : > { %729 = shalt.err (!%p726_p13)
}
  0x42   : > { %s730_s4 = scalar_lea.vmem %s977_s11, 2048  ;;  %s836_s5 = smov [#allocation6]  }
  0x43   : > { %p731_p0 = scmp.ne.s32.totalorder %s977_s11, %s730_s4  ;;  %s735_s27 = sshll.u32 %s836_s5, 4  ;;  %s736_s27 = int_to_ptr.vmem [resolvable:$false] %s735_s27 }
  0x44   : > { %s737_s7 = scalar_lea.vmem %s736_s27, 4096  ;;  %p738_p6 = scmp.lt.s32.totalorder %s977_s11, %s736_s27 }
  0x45   : > { %p733_p10 = pnand %p731_p0, %p717_p12  ;;  %p739_p1 = scmp.lt.s32.totalorder %s737_s7, %s730_s4 }
  0x47   : > { %p734_p3 = pneg %p733_p10  ;;  %p740_p5 = por %p739_p1, %p738_p6 }
  0x49   : > { %p741_p7 = pnand %p740_p5, %p734_p3 }
  0x4b   : > { %744 = shalt.err (!%p741_p7)
}
  0x4c   : > { %s837_s18 = smov 384   ;;  %s1122_s8 = smov 128  }
  0x4d   : > { %623 = dma.hbm_to_vmem [thread:$0]  (!%p1121_p8), %s972_s10, 2048, %s977_s11, %s979_s26, %s837_s18, %s1122_s8, %s835_s19  }
  0x4e   : > { %p1123_p12 = scmp.ne.s32.totalorder %s1118_s25, 0 }
  0x4f   : > { %p1124_p2 = scmp.ne.s32.totalorder (!%p1123_p12), %s1113_s20, 0 }
  0x50   : > { %215 = sbr.rel (%p1123_p12) target bundleno = 358 (0x166), region = 32 }
  0x57   : > { %798 = dma.done.wait (%p1124_p2), [#allocation4], 256  }
  0x58   : > { %800 = vsyncadd (%p1124_p2), [#allocation4], 4294967040  ;;  %s1016_s28 = sand.u32 1, %s815_s13   ;;  %p1125_p8 = scmp.ne.s32.totalorder %s1115_s22, 0 }
  0x59   : > { %s516_s29 = sshll.u32 %s1016_s28, 7  ;;  %s222_s6 = scalar_lea.sflag [#allocation7], %s1016_s28 }
  0x5a   : > { %s1020_s9 = scalar_lea.vmem [#allocation6], %s516_s29 }
  0x5b   : > { %802 = dma.done.wait (%p1125_p8), %s222_s6, 2048  }
  0x5c   : > { %804 = vsyncadd (%p1125_p8), %s222_s6, 4294965248  ;;  %v267_v0 = vld [vmem:[%s1020_s9] sm:$0xff]  ;;  %v268_v1 = vld [vmem:[%s1020_s9 + $0x8] sm:$0xff]  ;;  %p253_p9 = scmp.lt.s32.totalorder %s823_s15, 2  ;;  %s517_s20 = sshll.u32 %s1016_s28, 4 }
  0x5d   : > { %v269_v2 = vld [vmem:[%s1020_s9 + $0x10] sm:$0xff]  ;;  %v576_v3 = vpack.c.bf16 %v268_v1, %v267_v0  ;;  %v270_v4 = vld [vmem:[%s1020_s9 + $0x18] sm:$0xff]  ;;  %v271_v6 = vld [vmem:[%s1020_s9 + $0x20] sm:$0xff]  ;;  %s250_s11 = scalar_lea.vmem [#allocation8], %s517_s20  ;;  %s520_s4 = sshll.u32 %s823_s15, 7 }
  0x5e   : > { %v580_v5 = vpack.c.bf16 %v270_v4, %v269_v2  ;;  %v272_v7 = vld [vmem:[%s1020_s9 + $0x28] sm:$0xff]  ;;  %v265_v9 = vld [vmem:[#allocation3] sm:$0xff]  ;;  %v274_v11 = vld [vmem:[%s1020_s9 + $0x38] sm:$0xff]  ;;  %s254_s22 = scalar_select %p253_p9, %s823_s15, 2 }
  0x5f   : > { %577 = vmatprep.subr.bf16.mxu0 %v576_v3  ;;  %v584_v8 = vpack.c.bf16 %v272_v7, %v271_v6  ;;  %v273_v10 = vld [vmem:[%s1020_s9 + $0x30] sm:$0xff]  ;;  %573 = vmatprep.mubr.f32.mxu0 %v265_v9  ;;  %v275_v13 = vld [vmem:[%s1020_s9 + $0x40] sm:$0xff]  ;;  %v276_v14 = vld [vmem:[%s1020_s9 + $0x48] sm:$0xff]  ;;  %s394_s26 = sshll.u32 %s250_s11, 4  ;;  %s1054_s7 = scalar_lea.hbm %s1105_s3, %s520_s4  ;;  %s1049_s26 = int_to_ptr.vmem [resolvable:$true] %s394_s26 }
  0x60   : > { %579 = vmatpush3.bf16.msra.mxu0 %v576_v3  ;;  %v588_v12 = vpack.c.bf16 %v274_v11, %v273_v10  ;;  %v592_v15 = vpack.c.bf16 %v276_v14, %v275_v13  ;;  %v277_v16 = vld [vmem:[%s1020_s9 + $0x50] sm:$0xff]  ;;  %v278_v17 = vld [vmem:[%s1020_s9 + $0x58] sm:$0xff]  ;;  %v279_v19 = vld [vmem:[%s1020_s9 + $0x60] sm:$0xff]  ;;  %s255_s10 = scalar_lea.vmem %s1104_s2, %s254_s22  ;;  %s379_s18 = scalar_lea.sflag [#allocation5], %s1016_s28 }
  0x61   : > { %581 = vmatprep.subr.bf16.mxu0 %v580_v5  ;;  %v596_v18 = vpack.c.bf16 %v278_v17, %v277_v16  ;;  %v280_v20 = vld [vmem:[%s1020_s9 + $0x68] sm:$0xff]  ;;  %v281_v22 = vld [vmem:[%s1020_s9 + $0x70] sm:$0xff]  ;;  %v282_v23 = vld [vmem:[%s1020_s9 + $0x78] sm:$0xff]  ;;  %s745_s8 = scalar_lea.vmem %s1049_s26, 256  ;;  %p1126_p4 = scmp.ne.s32.totalorder %s1116_s23, 0 }
  0x62   : > { %v600_v21 = vpack.c.bf16 %v280_v20, %v279_v19  ;;  %v604_v24 = vpack.c.bf16 %v282_v23, %v281_v22  ;;  %v266_v25 = vld [vmem:[#allocation3 + $0x8] sm:$0xff]  ;;  %v518_v26 = vld [vmem:[%s255_s10] ss:$0 sm:$0xff]  ;;  %p746_p11 = scmp.ne.s32.totalorder %s1049_s26, %s745_s8  ;;  %s838_s15 = smov [#allocation8]  }
  0x63   : > { %s749_s29 = sshll.u32 %s838_s15, 4  ;;  %s750_s29 = int_to_ptr.vmem [resolvable:$false] %s749_s29 }
  0x64   : > { %583 = vmatpush3.bf16.msra.mxu0 %v580_v5  ;;  %p747_p13 = pnand %p746_p11, %p1126_p4  ;;  %s751_s6 = scalar_lea.vmem %s750_s29, 512 }
  0x65   : > { %585 = vmatprep.subr.bf16.mxu0 %v584_v8  ;;  %p752_p10 = scmp.lt.s32.totalorder %s1049_s26, %s750_s29  ;;  %p753_p3 = scmp.lt.s32.totalorder %s751_s6, %s745_s8 }
  0x66   : > { %p748_p0 = pneg %p747_p13 }
  0x67   : > { %p754_p6 = por %p753_p3, %p752_p10 }
  0x68   : > { %587 = vmatpush3.bf16.msra.mxu0 %v584_v8 }
  0x69   : > { %589 = vmatprep.subr.bf16.mxu0 %v588_v12  ;;  %p755_p1 = pnand %p754_p6, %p748_p0 }
  0x6c   : > { %591 = vmatpush3.bf16.msra.mxu0 %v588_v12 }
  0x6d   : > { %593 = vmatprep.subr.bf16.mxu0 %v592_v15 }
  0x70   : > { %595 = vmatpush3.bf16.msra.mxu0 %v592_v15 }
  0x71   : > { %597 = vmatprep.subr.bf16.mxu0 %v596_v18 }
  0x74   : > { %599 = vmatpush3.bf16.msra.mxu0 %v596_v18 }
  0x75   : > { %601 = vmatprep.subr.bf16.mxu0 %v600_v21 }
  0x78   : > { %603 = vmatpush3.bf16.msra.mxu0 %v600_v21 }
  0x79   : > { %605 = vmatprep.subr.bf16.mxu0 %v604_v24 }
  0x7c   : > { %607 = vmatpush3.bf16.msra.mxu0 %v604_v24 }
  0x7f   : > { %574 = vmatmul.mubr.f32.vlgmr.msra.gmra.mrb[0].mxu0 %v266_v25 }
 0x152   : > { %v575_v27 = vpop.f32.mrb[0].mxu0 }
 0x153   : > { %v375_v28 = vadd.f32 %v575_v27, %v518_v26  ;;  %v349_v29 = vpop.f32.mrb[1].mxu0 }
 0x154   : > { %v374_v30 = vadd.f32 %v518_v26, %v349_v29 }
 0x155   : > { %377 = vst [vmem:[%s250_s11 + $0x8] sm:$0xff] %v375_v28 }
 0x156   : > { %376 = vst [vmem:[%s250_s11] sm:$0xff] %v374_v30 }
 0x157   : > { %758 = shalt.err (!%p755_p1)
}
 0x158   : > { %s759_s9 = scalar_lea.hbm %s1054_s7, 256  ;;  %s763_s25 = scalar_lea.hbm %s1105_s3, 768 }
 0x159   : > { %p760_p5 = scmp.ne.s32.totalorder %s1054_s7, %s759_s9  ;;  %p764_p2 = scmp.lt.u32.totalorder %s1054_s7, %s1105_s3 }
 0x15a   : > { %p765_p8 = scmp.lt.u32.totalorder %s763_s25, %s759_s9  ;;  %p767_p11 = scmp.lt.u32.totalorder %s759_s9, %s1054_s7 }
 0x15b   : > { %p761_p7 = pnand %p760_p5, %p1126_p4 }
 0x15c   : > { %p766_p9 = por %p765_p8, %p764_p2 }
 0x15d   : > { %p762_p12 = pneg %p761_p7 }
 0x15e   : > { %p768_p13 = por %p767_p11, %p766_p9 }
 0x160   : > { %p769_p0 = pnand %p768_p13, %p762_p12 }
 0x162   : > { %772 = shalt.err (!%p769_p0)
}
 0x163   : > { %s839_s11 = smov 128   ;;  %s840_s4 = smov 384  }
 0x164   : > { %s841_s5 = smov 8  }
 0x165   : > { %614 = dma.vmem_to_hbm [thread:$0]  (%p1126_p4), %s1049_s26, 256, %s1054_s7, %s379_s18, %s839_s11, %s840_s4, %s841_s5  }
 0x166 PF: > { %p631_p10 = scmp.ge.s32.totalorder %s831_s17, 2  ;;  %s409_s27 = sand.u32 1, %s811_s12  }
 0x167   : > { %p1127_p3 = scmp.ne.s32.totalorder %s1117_s24, 0  ;;  %s410_s8 = scalar_lea.sflag [#allocation5], %s409_s27 }
 0x169   : > { %p625_p6 = pnand %p631_p10, %p1127_p3 }
 0x16b   : > { %806 = dma.done.wait (!%p625_p6), %s410_s8, 256  }
 0x16c   : > { %808 = vsyncadd (!%p625_p6), %s410_s8, 4294967040  ;;  %s20_s17 = sadd.s32 1, %s831_s17   ;;  %s1128_s12 = smov %s815_s13 }
 0x16d   : > { %p17_p1 = scmp.ge.s32.totalorder %s20_s17, 5   ;;  %s1129_s13 = smov %s819_s14 }
 0x16e   : > { %s1130_s14 = smov %s975_s21  ;;  %s1131_s15 = smov %s827_s16 }
 0x16f   : > { %s1132_s16 = smov %s1134_s30  ;;  %19 = sbr.rel (!%p17_p1) target bundleno = 7 (0x7), region = 94 }
 0x176   :  { %415 = vsyncpa [#allocation4], 1 }
 0x177   :  { %417 = vsyncpa [#allocation4 + $0x1], 1 }
 0x178   :  { %418 = vsyncpa [#allocation7], 1 }
 0x179   :  { %420 = vsyncpa [#allocation7 + $0x1], 1 }
 0x17a   :  { %421 = vsyncpa [#allocation5], 1 }
 0x17b   :  { %423 = vsyncpa [#allocation5 + $0x1], 1 }

</bundles_post_ra>
